<compile_context>
chip_gen: v6e
topology: v6e:2x2x1
jax: 0.10.0
libtpu: 0.0.40
codegen_flags: <defaults>
</compile_context>

<pallas_src>
import math

import jax
import jax.numpy as jnp
from jax.experimental import pallas as pl
from jax.experimental.pallas import tpu as pltpu


# ----------------------------------------------------------------------------
# Fused kernel: one grid step handles a whole batch block, VMEM-resident.
# ----------------------------------------------------------------------------
def _temporal_attention_kernel(x_ref, w1t_ref, bw_ref, out_ref, wts_ref):
    """
    x_ref  : (bb, S, H)   input sequence block
    w1t_ref: (H, H2)      first linear weight, pre-transposed
    bw_ref : (2, H2)      row 0 = b1, row 1 = w2 (second linear weight row)
    out_ref: (bb, 1, H)   pooled output (H in lanes)
    wts_ref: (bb, 1, S)   attention weights (S in lanes)
    """
    bb, S, H = x_ref.shape
    H2 = w1t_ref.shape[1]

    x = x_ref[...]                                                # (bb, S, H)

    # --- score MLP (all on the MXU) ------------------------------------------
    # Linear(H -> H2) as one batched matmul over every timestep in the block.
    w1t = jnp.broadcast_to(w1t_ref[...], (bb, H, H2))
    h = jnp.einsum('bsh,bhc->bsc', x, w1t,
                   preferred_element_type=jnp.float32)            # (bb, S, H2)
    h = jnp.maximum(h + bw_ref[0:1, :], 0.0)                      # +b1, ReLU (VPU)

    # Linear(H2 -> 1) as a matmul that lands the scores lane-dense:
    # (bb,1,H2) x (bb,S,H2) -> (bb,1,S).  b2 is omitted: softmax is
    # shift-invariant, so a scalar score bias cannot change either output.
    w2 = jnp.broadcast_to(bw_ref[1:2, :], (bb, 1, H2))
    scores = jnp.einsum('bqc,bsc->bqs', w2, h,
                        preferred_element_type=jnp.float32)       # (bb, 1, S)

    # --- numerically stable softmax over the sequence (lane) axis ------------
    m = jnp.max(scores, axis=-1, keepdims=True)                   # (bb, 1, 1)
    e = jnp.exp(scores - m)
    denom = jnp.sum(e, axis=-1, keepdims=True)
    w = e / denom                                                 # exact: sums to 1

    wts_ref[...] = w.astype(wts_ref.dtype)

    # --- weighted temporal pooling as an MXU matmul ---------------------------
    # (bb,1,S) x (bb,S,H) -> (bb,1,H)
    out = jnp.einsum('bqs,bsh->bqh', w, x,
                     preferred_element_type=jnp.float32)
    out_ref[...] = out.astype(out_ref.dtype)


def temporal_attention_forward(x, kparams, *, batch_block=None):
    """x: [B, S, H] -> (pooled [B, H], weights [B, S, 1])."""
    B, S, H = x.shape
    H2 = kparams["w1t"].shape[1]

    # Single grid step for small batches; only tile the (leading) batch axis
    # if B grows large enough that a (bb, S, H) block would pressure VMEM.
    if batch_block is None or batch_block >= B or B % batch_block != 0:
        bb = B
    else:
        bb = batch_block
    num_blocks = B // bb

    out3, wts3 = pl.pallas_call(
        _temporal_attention_kernel,
        out_shape=(
            jax.ShapeDtypeStruct((B, 1, H), jnp.float32),
            jax.ShapeDtypeStruct((B, 1, S), jnp.float32),
        ),
        grid_spec=pltpu.PrefetchScalarGridSpec(
            num_scalar_prefetch=0,
            grid=(num_blocks,),
            in_specs=[
                pl.BlockSpec((bb, S, H), lambda i: (i, 0, 0)),   # x block
                pl.BlockSpec((H, H2), lambda i: (0, 0)),         # w1^T (resident)
                pl.BlockSpec((2, H2), lambda i: (0, 0)),         # packed [b1; w2]
            ],
            out_specs=[
                pl.BlockSpec((bb, 1, H), lambda i: (i, 0, 0)),   # pooled output
                pl.BlockSpec((bb, 1, S), lambda i: (i, 0, 0)),   # attention weights
            ],
        ),
        compiler_params=pltpu.CompilerParams(
            dimension_semantics=(("parallel",) if num_blocks > 1
                                 else ("arbitrary",))),
    )(x, kparams["w1t"], kparams["bw"])

    # Metadata-only reshapes back to the module's output shapes.
    return out3.reshape(B, H), wts3.reshape(B, S, 1)


# ----------------------------------------------------------------------------
# Parameters (PyTorch nn.Linear convention) + one-time kernel layout prep.
# ----------------------------------------------------------------------------
def init_params(key, hidden_dim):
    """PyTorch-Linear-style init: uniform(-1/sqrt(fan_in), +1/sqrt(fan_in))."""
    h2 = hidden_dim // 2
    k = jax.random.split(key, 4)

    def lin(kw, kb, out_f, in_f):
        bound = 1.0 / math.sqrt(in_f)
        w = jax.random.uniform(kw, (out_f, in_f), jnp.float32, -bound, bound)
        b = jax.random.uniform(kb, (out_f,), jnp.float32, -bound, bound)
        return w, b

    w1, b1 = lin(k[0], k[1], h2, hidden_dim)   # (H2, H), (H2,)
    w2, b2 = lin(k[2], k[3], 1, h2)            # (1, H2), (1,)
    return dict(w1=w1, b1=b1, w2=w2, b2=b2)


def prepare_kernel_params(params):
    """One-time layout prep — no transposes in the per-call forward path.

    b2 is intentionally not forwarded: a scalar bias on the pre-softmax scores
    has zero effect on the softmax weights and therefore on both outputs.
    """
    w1t = jnp.transpose(params["w1"])                           # (H, H2)
    bw = jnp.concatenate(
        [params["b1"].reshape(1, -1), params["w2"].reshape(1, -1)], axis=0
    )                                                           # (2, H2)
    return dict(w1t=w1t, bw=bw)


# ----------------------------------------------------------------------------
# Pure-JAX reference (mirrors the PyTorch module exactly, including b2).
# ----------------------------------------------------------------------------
def reference_forward(x, params):
    h = jnp.maximum(jnp.einsum("bsh,ch->bsc", x, params["w1"]) + params["b1"], 0.0)
    scores = jnp.einsum("bsc,oc->bso", h, params["w2"]) + params["b2"]   # (B, S, 1)
    w = jax.nn.softmax(scores, axis=1)
    return (x * w).sum(axis=1), w


if __name__ == "__main__":
    # Small shapes consistent with the module: batch=2, seq_len=8, hidden_dim=32.
    B, S, H = 2, 8, 32

    key = jax.random.PRNGKey(0)
    kx, kp = jax.random.split(key)
    x = jax.random.normal(kx, (B, S, H), jnp.float32)
    params = init_params(kp, H)
    kparams = prepare_kernel_params(params)

    out, wts = temporal_attention_forward(x, kparams)
    out = jax.block_until_ready(out)
    wts = jax.block_until_ready(wts)

    # Sanity check against the pure-JAX reference.
    ref_out, ref_wts = reference_forward(x, params)
    assert out.shape == (B, H) and wts.shape == (B, S, 1)
    assert jnp.allclose(wts, ref_wts, atol=1e-3, rtol=1e-3)
    assert jnp.allclose(out, ref_out, atol=1e-3, rtol=1e-3)
    # Exact softmax normalisation: weights sum to 1 along the sequence axis.
    assert jnp.allclose(wts.sum(axis=1), jnp.ones((B, 1)), atol=1e-5)

    print("KERNEL_OK")
</pallas_src>

<mosaic_0001>
module attributes {stable_mosaic.version = 11 : i64} {
  func.func @_temporal_attention_kernel(%arg0: i32, %arg1: memref<2x8x32xf32, #tpu.memory_space<vmem>>, %arg2: memref<32x16xf32, #tpu.memory_space<vmem>>, %arg3: memref<2x16xf32, #tpu.memory_space<vmem>>, %arg4: memref<2x1x32xf32, #tpu.memory_space<vmem>>, %arg5: memref<2x1x8xf32, #tpu.memory_space<vmem>>) attributes {dimension_semantics = [#tpu.dimension_semantics<arbitrary>], iteration_bounds = array<i64: 1>, scalar_prefetch = 0 : i64, scratch_operands = 0 : i64, tpu.core_type = #tpu.core_type<tc>, window_params = [{transform_indices = @transform_0, window_bounds = array<i64: 2, 8, 32>}, {pipeline_mode = #tpu.pipeline_mode<synchronous>, transform_indices = @transform_1, window_bounds = array<i64: 32, 16>}, {pipeline_mode = #tpu.pipeline_mode<synchronous>, transform_indices = @transform_2, window_bounds = array<i64: 2, 16>}, {transform_indices = @transform_3, window_bounds = array<i64: 2, 1, 32>}, {transform_indices = @transform_4, window_bounds = array<i64: 2, 1, 8>}]} {
    %c0 = arith.constant 0 : index
    %c0_0 = arith.constant 0 : index
    %c0_1 = arith.constant 0 : index
    %0 = vector.load %arg1[%c0, %c0_0, %c0_1] : memref<2x8x32xf32, #tpu.memory_space<vmem>>, vector<2x8x32xf32>
    %c0_2 = arith.constant 0 : index
    %c0_3 = arith.constant 0 : index
    %1 = vector.load %arg2[%c0_2, %c0_3] : memref<32x16xf32, #tpu.memory_space<vmem>>, vector<32x16xf32>
    %2 = vector.shape_cast %1 : vector<32x16xf32> to vector<1x32x16xf32>
    %3 = vector.broadcast %2 : vector<1x32x16xf32> to vector<2x32x16xf32>
    "tpu.trace_start"() <{level = 10 : i32, message = "bsh,bhc->bsc"}> : () -> ()
    %cst = arith.constant dense<0.000000e+00> : vector<2x8x16xf32>
    %4 = tpu.matmul %0, %3, %cst {dimension_numbers = #tpu.dot_dimension_numbers<[2], [1], [1], [2], [0, 0, 0, 1, 1, 2], [0], [0]>} : vector<2x8x32xf32>, vector<2x32x16xf32>, vector<2x8x16xf32> -> vector<2x8x16xf32>
    "tpu.trace_stop"() : () -> ()
    %c0_4 = arith.constant 0 : index
    %c0_5 = arith.constant 0 : index
    %5 = vector.load %arg3[%c0_4, %c0_5] : memref<2x16xf32, #tpu.memory_space<vmem>>, vector<1x16xf32>
    %6 = vector.shape_cast %5 : vector<1x16xf32> to vector<1x1x16xf32>
    %7 = vector.broadcast %6 : vector<1x1x16xf32> to vector<2x8x16xf32>
    %8 = arith.addf %4, %7 : vector<2x8x16xf32>
    %cst_6 = arith.constant 0.000000e+00 : f32
    %9 = vector.broadcast %cst_6 : f32 to vector<2x8x16xf32>
    %10 = arith.maximumf %8, %9 : vector<2x8x16xf32>
    %c1 = arith.constant 1 : index
    %c0_7 = arith.constant 0 : index
    %11 = vector.load %arg3[%c1, %c0_7] : memref<2x16xf32, #tpu.memory_space<vmem>>, vector<1x16xf32>
    %12 = vector.shape_cast %11 : vector<1x16xf32> to vector<1x1x16xf32>
    %13 = vector.broadcast %12 : vector<1x1x16xf32> to vector<2x1x16xf32>
    "tpu.trace_start"() <{level = 10 : i32, message = "bqc,bsc->bqs"}> : () -> ()
    %cst_8 = arith.constant dense<0.000000e+00> : vector<2x1x8xf32>
    %14 = tpu.matmul %13, %10, %cst_8 {dimension_numbers = #tpu.dot_dimension_numbers<[2], [2], [1], [1], [0, 0, 0, 1, 1, 1], [0], [0]>} : vector<2x1x16xf32>, vector<2x8x16xf32>, vector<2x1x8xf32> -> vector<2x1x8xf32>
    "tpu.trace_stop"() : () -> ()
    %cst_9 = arith.constant dense<0xFF800000> : vector<2x1xf32>
    %15 = vector.multi_reduction <maximumf>, %14, %cst_9 [2] : vector<2x1x8xf32> to vector<2x1xf32>
    %16 = vector.shape_cast %15 : vector<2x1xf32> to vector<2x1x1xf32>
    %17 = vector.broadcast %16 : vector<2x1x1xf32> to vector<2x1x8xf32>
    %18 = arith.subf %14, %17 : vector<2x1x8xf32>
    %19 = math.exp %18 : vector<2x1x8xf32>
    %cst_10 = arith.constant dense<0.000000e+00> : vector<2x1xf32>
    %20 = vector.multi_reduction <add>, %19, %cst_10 [2] : vector<2x1x8xf32> to vector<2x1xf32>
    %21 = vector.shape_cast %20 : vector<2x1xf32> to vector<2x1x1xf32>
    %22 = vector.broadcast %21 : vector<2x1x1xf32> to vector<2x1x8xf32>
    %23 = arith.divf %19, %22 : vector<2x1x8xf32>
    %c0_11 = arith.constant 0 : index
    %c0_12 = arith.constant 0 : index
    %c0_13 = arith.constant 0 : index
    %24 = vector.load %arg5[%c0_11, %c0_12, %c0_13] : memref<2x1x8xf32, #tpu.memory_space<vmem>>, vector<2x1x8xf32>
    tpu.vector_store %arg5[%c0_11, %c0_12, %c0_13], %23 {strides = array<i32>} : memref<2x1x8xf32, #tpu.memory_space<vmem>>, vector<2x1x8xf32>,
    "tpu.trace_start"() <{level = 10 : i32, message = "bqs,bsh->bqh"}> : () -> ()
    %cst_14 = arith.constant dense<0.000000e+00> : vector<2x1x32xf32>
    %25 = tpu.matmul %23, %0, %cst_14 {dimension_numbers = #tpu.dot_dimension_numbers<[2], [1], [1], [2], [0, 0, 0, 1, 1, 2], [0], [0]>} : vector<2x1x8xf32>, vector<2x8x32xf32>, vector<2x1x32xf32> -> vector<2x1x32xf32>
    "tpu.trace_stop"() : () -> ()
    %c0_15 = arith.constant 0 : index
    %c0_16 = arith.constant 0 : index
    %c0_17 = arith.constant 0 : index
    %26 = vector.load %arg4[%c0_15, %c0_16, %c0_17] : memref<2x1x32xf32, #tpu.memory_space<vmem>>, vector<2x1x32xf32>
    tpu.vector_store %arg4[%c0_15, %c0_16, %c0_17], %25 {strides = array<i32>} : memref<2x1x32xf32, #tpu.memory_space<vmem>>, vector<2x1x32xf32>,
    return
  }
  func.func @transform_0(%arg0: i32) -> (i32, i32, i32) {
    %c0_i32 = arith.constant 0 : i32
    %c0_i32_0 = arith.constant 0 : i32
    %c0_i32_1 = arith.constant 0 : i32
    return %arg0, %c0_i32, %c0_i32_0 : i32, i32, i32
  }
  func.func @transform_1(%arg0: i32) -> (i32, i32) {
    %c0_i32 = arith.constant 0 : i32
    %c0_i32_0 = arith.constant 0 : i32
    %c0_i32_1 = arith.constant 0 : i32
    return %c0_i32, %c0_i32_0 : i32, i32
  }
  func.func @transform_2(%arg0: i32) -> (i32, i32) {
    %c0_i32 = arith.constant 0 : i32
    %c0_i32_0 = arith.constant 0 : i32
    %c0_i32_1 = arith.constant 0 : i32
    return %c0_i32, %c0_i32_0 : i32, i32
  }
  func.func @transform_3(%arg0: i32) -> (i32, i32, i32) {
    %c0_i32 = arith.constant 0 : i32
    %c0_i32_0 = arith.constant 0 : i32
    %c0_i32_1 = arith.constant 0 : i32
    return %arg0, %c0_i32, %c0_i32_0 : i32, i32, i32
  }
  func.func @transform_4(%arg0: i32) -> (i32, i32, i32) {
    %c0_i32 = arith.constant 0 : i32
    %c0_i32_0 = arith.constant 0 : i32
    %c0_i32_1 = arith.constant 0 : i32
    return %arg0, %c0_i32, %c0_i32_0 : i32, i32, i32
  }
}

</mosaic_0001>

<bundles_post_ra>
// kernel: tpu_custom_call.1
= control target key start
LH: loop header
LB: loop body
LE: loop exit
PB: predicated region body
PF: predicated region fallthrough
CT: control target
= control target key end

     0   :  { %10 = vsyncpa [#allocation3], 0  ;;  %v663_v1 = vmov 0.0   ;;  %s736_s0 = inlined_call_operand.vmem [shape: f32[2,8,32], index: 0, kind: input, shape index: {}]   ;;  %s737_s1 = inlined_call_operand.vmem [shape: f32[32,16], index: 1, kind: input, shape index: {}]   ;;  %s738_s2 = inlined_call_operand.vmem [shape: f32[2,16], index: 2, kind: input, shape index: {}]   ;;  %s739_s3 = inlined_call_operand.hbm [shape: f32[2,1,32], index: 3, kind: output, shape index: {0}]   ;;  %s740_s4 = inlined_call_operand.hbm [shape: f32[2,1,8], index: 4, kind: output, shape index: {1}]  }
   0x1   :  { %v23_v0 = vld [vmem:[%s737_s1 + $0x18] sm:$0xff]  ;;  %563 = vmatprep.subr.mxu0 %v663_v1  ;;  %574 = vmatprep.subr.mxu1 %v663_v1  ;;  %v22_v2 = vld [vmem:[%s737_s1 + $0x10] sm:$0xff] }
   0x2   :  { %564 = vmatpush3.msra.mxu0 %v23_v0  ;;  %575 = vmatpush3.msra.mxu1 %v23_v0 }
   0x3   :  { %11 = vsyncpa [#allocation5], 0  ;;  %565 = vmatprep.subr.mxu0 %v663_v1  ;;  %576 = vmatprep.subr.mxu1 %v663_v1  ;;  %v21_v3 = vld [vmem:[%s737_s1 + $0x8] sm:$0xff]  ;;  %v20_v4 = vld [vmem:[%s737_s1] sm:$0xff]  ;;  %vm664_vm0 = vmmov 0   ;;  %vm29_vm1 = vcmask 261120  }
   0x4   :  { %566 = vmatpush3.msra.mxu0 %v22_v2  ;;  %577 = vmatpush3.msra.mxu1 %v22_v2  ;;  %v18_v5 = vld [vmem:[%s736_s0] sm:$0xff]  ;;  %v19_v6 = vld [vmem:[%s736_s0 + $0x8] sm:$0xff]  ;;  %vm179_vm2 = vcmask 130048   ;;  %vm329_vm3 = vcmask 57344   ;;  %vm354_vm4 = vcmask 64512  }
   0x5   :  { %567 = vmatprep.subr.mxu0 %v663_v1  ;;  %578 = vmatprep.subr.mxu1 %v663_v1  ;;  %v536_v7 = vld [vmem:[%s738_s2] ss:$0 sm:$0xff]  ;;  %v178_v16 = vld [vmem:[%s738_s2 + $0x1] sm:$0x1]  ;;  %s665_s2 = smov [#allocation4]  }
   0x6   :  { %568 = vmatpush3.msra.mxu0 %v21_v3  ;;  %571 = vmatprep.mubr.msk.f32.mxu0 %vm664_vm0, %v663_v1  ;;  %s521_s29 = sshll.u32 %s665_s2, 4  ;;  %s522_s29 = int_to_ptr.vmem [resolvable:$true] %s521_s29 }
   0x7   :  { %569 = vmatprep.subr.mxu0 %v663_v1  ;;  %579 = vmatpush3.msra.mxu1 %v21_v3  ;;  %s619_s30 = scalar_lea.vmem %s522_s29, 32  ;;  %p624_p1 = scmp.lt.s32.totalorder %s522_s29, %s522_s29 }
   0x8   :  { %570 = vmatpush3.msra.mxu0 %v20_v4  ;;  %580 = vmatprep.subr.mxu1 %v663_v1  ;;  %p620_p0 = scmp.ne.s32.totalorder %s522_s29, %s619_s30  ;;  %p625_p2 = scmp.lt.s32.totalorder %s619_s30, %s619_s30 }
   0x9   :  { %572 = vmatmul.mubr.msk.f32.vlgmr.msra.gmra.mxu0 %vm29_vm1, %v18_v5  ;;  %581 = vmatpush3.msra.mxu1 %v20_v4 }
   0xa   :  { %582 = vmatprep.mubr.msk.f32.mxu1 %vm664_vm0, %v663_v1  ;;  %585 = vmatprep.subr.mxu0 %v663_v1  ;;  %p626_p3 = por %p625_p2, %p624_p1 }
   0xb   :  { %583 = vmatmul.mubr.msk.f32.vlgmr.msra.gmra.mxu1 %vm29_vm1, %v19_v6  ;;  %587 = vmatprep.mubr.msk.f32.mxu0 %vm664_vm0, %v663_v1 }
   0xc   :  { %590 = vmatprep.subr.mxu1 %v663_v1  ;;  %592 = vmatprep.mubr.msk.f32.mxu1 %vm664_vm0, %v663_v1  ;;  %p627_p4 = pnand %p626_p3, %p620_p0 }
  0xc9   :  { %v99_v8 = vpop.f32.mrf.mxu0 }
  0xca   :  { %v100_v9 = vadd.f32 %v536_v7, %v99_v8 }
  0xcb   :  { %v573_v10 = vpop.f32.mrf.mxu0  ;;  %v172_v11 = vpop.f32.mrf.mxu1 }
  0xcc   :  { %v176_v12 = vmax.f32 %v100_v9, 0.0  ;;  %v173_v13 = vadd.f32 %v536_v7, %v172_v11 }
  0xcd   :  { %v584_v14 = vpop.f32.mrf.mxu1 }
  0xce   :  { %v177_v15 = vmax.f32 %v173_v13, 0.0  ;;  %586 = vmatpush3.xpose.msk.msra.mxu0 %vm179_vm2, %v176_v12 }
  0xcf   :  { %595 = vmatprep.subr.mxu0 %v663_v1 }
  0xd0   :  { %591 = vmatpush3.xpose.msk.msra.mxu1 %vm179_vm2, %v177_v15 }
  0xd1   :  { %588 = vmatmul.mubr.msk.f32.vlgmr.msra.gmra.mxu0 %vm179_vm2, %v178_v16  ;;  %600 = vmatprep.subr.mxu1 %v663_v1 }
  0xd2   :  { %596 = vmatpush3.msra.mxu0 %v18_v5  ;;  %597 = vmatprep.mubr.msk.f32.mxu0 %vm664_vm0, %v663_v1 }
  0xd3   :  { %593 = vmatmul.mubr.msk.f32.vlgmr.msra.gmra.mxu1 %vm179_vm2, %v178_v16 }
  0xd4   :  { %601 = vmatpush3.msra.mxu1 %v19_v6  ;;  %602 = vmatprep.mubr.msk.f32.mxu1 %vm664_vm0, %v663_v1 }
 0x191   :  { %v252_v17 = vpop.f32.mrf.mxu0 }
 0x192   :  { %v330_v18 = vsel %vm329_vm3, %v252_v17, -inf }
 0x193   :  { %331 = vmax.xlane.f32.xlu0 %v330_v18  ;;  %v589_v19 = vpop.f32.mrf.mxu0  ;;  %v325_v20 = vpop.f32.mrf.mxu1 }
 0x194   :  { %v333_v21 = vsel %vm329_vm3, %v325_v20, -inf }
 0x195   :  { %v594_v22 = vpop.f32.mrf.mxu1 }
 0x197   :  { %334 = vmax.xlane.f32.xlu0 %v333_v21 }
 0x21c   :  { %v332_v23 = vpop.xlane.xlu0 %331 }
 0x21d   :  { %v336_v24 = vsub.f32 %v252_v17, %v332_v23 }
 0x21f   :  { %v338_v25 = vmul.f32 1.442695, %v336_v24 }
 0x220   :  { %v335_v26 = vpop.xlane.xlu0 %334 }
 0x221   :  { %611 = vpow2.f32 %v338_v25  ;;  %v337_v27 = vsub.f32 %v325_v20, %v335_v26 }
 0x223   :  { %v340_v28 = vmul.f32 1.442695, %v337_v27 }
 0x225   :  { %613 = vpow2.f32 %v340_v28 }
 0x22e   :  { %v612_v29 = vpop.eup %611 }
 0x22f   :  { %v342_v30 = vsel %vm329_vm3, %v612_v29, 0.0 }
 0x230   :  { %343 = vadd.xlane.f32.xlu1 %v342_v30 }
 0x232   :  { %v614_v31 = vpop.eup %613 }
 0x233   :  { %v345_v32 = vsel %vm329_vm3, %v614_v31, 0.0 }
 0x234   :  { %346 = vadd.xlane.f32.xlu1 %v345_v32 }
 0x2b9   :  { %v344_v33 = vpop.xlane.xlu1 %343 }
 0x2ba   :  { %615 = vrcp.f32 %v344_v33 }
 0x2bd   :  { %v347_v34 = vpop.xlane.xlu1 %346 }
 0x2be   :  { %617 = vrcp.f32 %v347_v34 }
 0x2c7   :  { %v616_v35 = vpop.eup %615 }
 0x2c8   :  { %v349_v36 = vmul.f32 %v616_v35, %v612_v29 }
 0x2ca   :  { %598 = vmatmul.mubr.msk.f32.vlgmr.msra.gmra.mxu0 %vm354_vm4, %v349_v36  ;;  %352 = vst.msk [vmem:[#allocation4] sm:$0x1] %vm329_vm3, %v349_v36 }
 0x2cb   :  { %v618_v37 = vpop.eup %617 }
 0x2cc   :  { %v351_v38 = vmul.f32 %v618_v37, %v614_v31 }
 0x2ce   :  { %603 = vmatmul.mubr.msk.f32.vlgmr.msra.gmra.mxu1 %vm354_vm4, %v351_v38  ;;  %353 = vst.msk [vmem:[#allocation4 + $0x1] sm:$0x1] %vm329_vm3, %v351_v38 }
 0x2cf   :  { %630 = shalt.err (!%p627_p4)
}
 0x2d0   :  { %s666_s5 = smov 16   ;;  %s667_s6 = smov 1   ;;  %vm501_vm5 = vcmask 253952  }
 0x2d1   :  { %527 = dma.vmem_to_hbm [thread:$0]  %s522_s29, 32, %s740_s4, [#allocation5], %s666_s5, %s666_s5, %s667_s6  }
 0x2d2   :  { %s668_s9 = smov [#allocation2]  }
 0x2d3   :  { %s509_s10 = sshll.u32 %s668_s9, 4  ;;  %s510_s10 = int_to_ptr.vmem [resolvable:$true] %s509_s10 }
 0x2d4   :  { %s639_s11 = scalar_lea.vmem %s510_s10, 32  ;;  %p644_p6 = scmp.lt.s32.totalorder %s510_s10, %s510_s10 }
 0x2d5   :  { %p640_p5 = scmp.ne.s32.totalorder %s510_s10, %s639_s11  ;;  %p645_p7 = scmp.lt.s32.totalorder %s639_s11, %s639_s11 }
 0x2d7   :  { %p646_p8 = por %p645_p7, %p644_p6 }
 0x2d9   :  { %p647_p9 = pnand %p646_p8, %p640_p5 }
 0x38a   :  { %v424_v39 = vpop.f32.mrf.mxu0 }
 0x38b   :  { %502 = vst.msk [vmem:[#allocation2] sm:$0x1] %vm501_vm5, %v424_v39 }
 0x38c   :  { %v599_v40 = vpop.f32.mrf.mxu0 }
 0x38e   :  { %v497_v41 = vpop.f32.mrf.mxu1 }
 0x38f   :  { %503 = vst.msk [vmem:[#allocation2 + $0x1] sm:$0x1] %vm501_vm5, %v497_v41 }
 0x390   :  { %v604_v42 = vpop.f32.mrf.mxu1 }
 0x391   :  { %650 = shalt.err (!%p647_p9)
}
 0x392   :  { %515 = dma.vmem_to_hbm [thread:$0]  %s510_s10, 32, %s739_s3, [#allocation3], %s666_s5, %s666_s5, %s667_s6  }
 0x393   :  { %659 = dma.done.wait [#allocation3], 32  }
 0x394   :  { %660 = vsyncadd [#allocation3], 4294967264 }
 0x395   :  { %661 = dma.done.wait [#allocation5], 32  }
 0x396   :  { %662 = vsyncadd [#allocation5], 4294967264 }
 0x397   :  { %534 = vsyncpa [#allocation3], 1 }
 0x398   :  { %535 = vsyncpa [#allocation5], 1 }

</bundles_post_ra>
